<compile_context>
chip_gen: v5e
topology: v5e:2x2
jax: 0.10.0
libtpu: 0.0.40
codegen_flags: <defaults>
</compile_context>

<pallas_src>
import functools

import jax
import jax.numpy as jnp
from jax.experimental import pallas as pl
from jax.experimental.pallas import tpu as pltpu

NEG_SLOPE = 0.2   # LeakyReLU slope
LANE = 128
SUBLANE = 8
TM_MAX = 1024     # cap on M tile (rows of patches)


def _round_up(x, m):
    return ((x + m - 1) // m) * m


# ----------------------------- Pallas kernel ------------------------------ #
def _conv_mm_kernel(p_ref, w_ref, b_ref, o_ref, *, apply_act):
    """Whole-K MXU matmul of a (tm,K) patch tile with bias + LeakyReLU fused."""
    acc = jnp.dot(p_ref[...], w_ref[...], preferred_element_type=jnp.float32)
    acc = acc + b_ref[...]
    if apply_act:
        acc = jnp.where(acc >= 0.0, acc, NEG_SLOPE * acc)
    o_ref[...] = acc.astype(o_ref.dtype)


def _pad2d(a, rows, cols):
    pr, pc = rows - a.shape[0], cols - a.shape[1]
    if pr or pc:
        a = jnp.pad(a, ((0, pr), (0, pc)))
    return a


def conv_mm(patches, w_mat, bias, apply_act, out_dtype):
    """patches [M,K] (bf16) @ w_mat [K,N] + bias, optional LeakyReLU -> [M,N]."""
    M, K = patches.shape
    _, N = w_mat.shape

    # ---- M tiling: >=2 grid steps whenever possible (v7x 2nd TensorCore) ----
    if M <= SUBLANE:
        tm, Mp = SUBLANE, SUBLANE
    elif M <= 2 * TM_MAX:
        tm = _round_up(-(-M // 2), SUBLANE)
        Mp = 2 * tm
    else:
        tm = TM_MAX
        Mp = _round_up(M, tm)

    tn = LANE                        # lane-dense output stores
    Np = _round_up(N, tn)

    # ---- pad: patches already bf16 (cast happened in im2col) ----
    p = _pad2d(patches, Mp, K)
    w = _pad2d(w_mat.astype(jnp.bfloat16), K, Np)
    b = _pad2d(bias.reshape(1, N).astype(jnp.float32), 1, Np)

    grid_m, grid_n = Mp // tm, Np // tn

    # Patches stream: deepen pipelining only when there are many M steps.
    if grid_m >= 4:
        patches_spec = pl.BlockSpec((tm, K), lambda i, j: (i, 0),
                                    pipeline_mode=pl.Buffered(3))
    else:
        patches_spec = pl.BlockSpec((tm, K), lambda i, j: (i, 0))

    out_bytes = jnp.dtype(out_dtype).itemsize
    cost = pl.CostEstimate(
        flops=2 * Mp * Np * K,
        transcendentals=0,
        bytes_accessed=Mp * K * 2 + K * Np * 2 + Np * 4 + Mp * Np * out_bytes)

    out = pl.pallas_call(
        functools.partial(_conv_mm_kernel, apply_act=apply_act),
        out_shape=jax.ShapeDtypeStruct((Mp, Np), out_dtype),
        grid_spec=pltpu.PrefetchScalarGridSpec(
            num_scalar_prefetch=0,
            grid=(grid_m, grid_n),
            in_specs=[
                patches_spec,
                # Whole-K weight / bias blocks: index constant in i -> DMA'd
                # once, VMEM-resident across every M tile.
                pl.BlockSpec((K, tn), lambda i, j: (0, j)),
                pl.BlockSpec((1, tn), lambda i, j: (0, j)),
            ],
            out_specs=pl.BlockSpec((tm, tn), lambda i, j: (i, j)),
        ),
        compiler_params=pltpu.CompilerParams(
            dimension_semantics=("parallel", "parallel"),
            vmem_limit_bytes=48 * 1024 * 1024),
        cost_estimate=cost,
    )(p, w, b)

    return out[:M, :N]


# ------------------------------ JAX glue ----------------------------------- #
def _im2col(x_nhwc, k, stride, pad):
    """Extract kxk patches -> bf16 [B*Ho*Wo, k*k*C] with (kh, kw, C) column order."""
    # Cast BEFORE the kxk duplication so the materialized patches are bf16.
    x = x_nhwc.astype(jnp.bfloat16)
    x = jnp.pad(x, ((0, 0), (pad, pad), (pad, pad), (0, 0)))
    B, H, W, C = x.shape
    Ho = (H - k) // stride + 1
    Wo = (W - k) // stride + 1
    cols = []
    for di in range(k):
        for dj in range(k):
            cols.append(
                x[:, di:di + stride * Ho:stride, dj:dj + stride * Wo:stride, :])
    p = jnp.stack(cols, axis=3)                  # [B, Ho, Wo, k*k, C]
    return p.reshape(B * Ho * Wo, k * k * C), (B, Ho, Wo)


def conv2d_pallas(x_nhwc, w_oihw, bias, stride, pad, apply_act, out_dtype):
    """Conv2d (PyTorch OIHW weights) + optional fused LeakyReLU, NHWC in/out."""
    C_out, C_in, kh, kw = w_oihw.shape
    patches, (B, Ho, Wo) = _im2col(x_nhwc, kh, stride, pad)
    # Column order of patches is (kh, kw, C_in) -> match weight layout.
    w_mat = jnp.transpose(w_oihw, (2, 3, 1, 0)).reshape(kh * kw * C_in, C_out)
    out = conv_mm(patches, w_mat, bias, apply_act, out_dtype)
    return out.reshape(B, Ho, Wo, C_out)


def spectral_normalize(w, key, n_iter=30):
    """Divide weight by its largest singular value (power iteration).

    Note: PyTorch's spectral_norm keeps a persistent random `u` updated once
    per training forward; this init-time power iteration converges to the same
    sigma but will differ numerically from a ported PyTorch checkpoint."""
    w_mat = w.reshape(w.shape[0], -1)
    u = jax.random.normal(key, (w_mat.shape[0],), jnp.float32)
    u = u / (jnp.linalg.norm(u) + 1e-12)
    v = jnp.zeros((w_mat.shape[1],), jnp.float32)
    for _ in range(n_iter):
        v = w_mat.T @ u
        v = v / (jnp.linalg.norm(v) + 1e-12)
        u = w_mat @ v
        u = u / (jnp.linalg.norm(u) + 1e-12)
    sigma = u @ (w_mat @ v)
    return w / sigma


def init_params(key):
    """Deterministic init mirroring weights_init_discriminator: N(0, 0.02)."""
    specs = [
        (32, 1, 4, 4),    # conv1
        (64, 32, 4, 4),   # conv2
        (128, 64, 4, 4),  # conv3
        (1, 128, 3, 3),   # conv_out
    ]
    params = []
    for s in specs:
        key, k_w, k_u = jax.random.split(key, 3)
        w = jax.random.normal(k_w, s, jnp.float32) * 0.02
        b = jnp.zeros((s[0],), jnp.float32)
        params.append((spectral_normalize(w, k_u), b))
    return params


def discriminator_forward(x_nchw, params):
    """Forward pass: x [B,1,H,W] -> [B,1,H/8,W/8] (NCHW, float32)."""
    x = jnp.transpose(x_nchw, (0, 2, 3, 1))  # NCHW -> NHWC
    (w1, b1), (w2, b2), (w3, b3), (w4, b4) = params
    # Intermediate activations stored in bf16 (mem-bound layers); final in f32.
    x = conv2d_pallas(x, w1, b1, stride=2, pad=1, apply_act=True,
                      out_dtype=jnp.bfloat16)
    # dropout(0.3): identity at inference
    x = conv2d_pallas(x, w2, b2, stride=2, pad=1, apply_act=True,
                      out_dtype=jnp.bfloat16)
    x = conv2d_pallas(x, w3, b3, stride=2, pad=1, apply_act=True,
                      out_dtype=jnp.bfloat16)
    x = conv2d_pallas(x, w4, b4, stride=1, pad=1, apply_act=False,
                      out_dtype=jnp.float32)
    return jnp.transpose(x, (0, 3, 1, 2))    # NHWC -> NCHW


# --------------------------- pure-JAX reference ---------------------------- #
def _reference_forward(x_nchw, params):
    def conv(x, w, b, stride, pad):
        y = jax.lax.conv_general_dilated(
            x, w, window_strides=(stride, stride),
            padding=((pad, pad), (pad, pad)),
            dimension_numbers=("NCHW", "OIHW", "NCHW"))
        return y + b.reshape(1, -1, 1, 1)

    def lrelu(x):
        return jnp.where(x >= 0.0, x, NEG_SLOPE * x)

    (w1, b1), (w2, b2), (w3, b3), (w4, b4) = params
    x = lrelu(conv(x_nchw, w1, b1, 2, 1))
    x = lrelu(conv(x, w2, b2, 2, 1))
    x = lrelu(conv(x, w3, b3, 2, 1))
    return conv(x, w4, b4, 1, 1)


if __name__ == "__main__":
    key = jax.random.PRNGKey(0)
    k_param, k_input = jax.random.split(key)

    params = init_params(k_param)
    x = jax.random.normal(k_input, (2, 1, 16, 16), jnp.float32)  # NCHW input

    out = discriminator_forward(x, params)
    out = jax.block_until_ready(out)

    assert out.shape == (2, 1, 2, 2), out.shape

    ref = jax.block_until_ready(_reference_forward(x, params))
    # bf16 MXU inputs + bf16 intermediate activations with f32 accumulation
    # -> loosened tolerance vs the full-f32 reference (intentional; GAN
    # discriminator outputs tolerate this).
    max_err = float(jnp.max(jnp.abs(out - ref)))
    assert jnp.allclose(out, ref, atol=3e-2, rtol=3e-2), max_err

    print("KERNEL_OK")
</pallas_src>

<mosaic_0001>
module attributes {stable_mosaic.version = 11 : i64} {
  func.func @_conv_mm_kernel(%arg0: i32, %arg1: i32, %arg2: memref<64x16xbf16, #tpu.memory_space<vmem>>, %arg3: memref<16x128xbf16, #tpu.memory_space<vmem>>, %arg4: memref<1x128xf32, #tpu.memory_space<vmem>>, %arg5: memref<64x128xbf16, #tpu.memory_space<vmem>>) attributes {dimension_semantics = [#tpu.dimension_semantics<parallel>, #tpu.dimension_semantics<parallel>], iteration_bounds = array<i64: 2, 1>, scalar_prefetch = 0 : i64, scratch_operands = 0 : i64, tpu.core_type = #tpu.core_type<tc>, window_params = [{transform_indices = @transform_0, window_bounds = array<i64: 64, 16>}, {transform_indices = @transform_1, window_bounds = array<i64: 16, 128>}, {transform_indices = @transform_2, window_bounds = array<i64: 1, 128>}, {transform_indices = @transform_3, window_bounds = array<i64: 64, 128>}]} {
    %c0 = arith.constant 0 : index
    %c0_0 = arith.constant 0 : index
    %0 = vector.load %arg2[%c0, %c0_0] : memref<64x16xbf16, #tpu.memory_space<vmem>>, vector<64x16xbf16>
    %c0_1 = arith.constant 0 : index
    %c0_2 = arith.constant 0 : index
    %1 = vector.load %arg3[%c0_1, %c0_2] : memref<16x128xbf16, #tpu.memory_space<vmem>>, vector<16x128xbf16>
    %cst = arith.constant dense<0.000000e+00> : vector<64x128xf32>
    %2 = tpu.matmul %0, %1, %cst {dimension_numbers = #tpu.dot_dimension_numbers<[1], [0], [0], [1], [0, 0, 1, 1], [], []>} : vector<64x16xbf16>, vector<16x128xbf16>, vector<64x128xf32> -> vector<64x128xf32>
    %c0_3 = arith.constant 0 : index
    %c0_4 = arith.constant 0 : index
    %3 = vector.load %arg4[%c0_3, %c0_4] : memref<1x128xf32, #tpu.memory_space<vmem>>, vector<1x128xf32>
    %4 = vector.broadcast %3 : vector<1x128xf32> to vector<64x128xf32>
    %5 = arith.addf %2, %4 : vector<64x128xf32>
    %cst_5 = arith.constant 0.000000e+00 : f32
    %6 = vector.broadcast %cst_5 : f32 to vector<64x128xf32>
    %7 = arith.cmpf oge, %5, %6 : vector<64x128xf32>
    %cst_6 = arith.constant 2.000000e-01 : f32
    %8 = vector.broadcast %cst_6 : f32 to vector<64x128xf32>
    %9 = arith.mulf %8, %5 : vector<64x128xf32>
    %10 = arith.select %7, %5, %9 : vector<64x128xi1>, vector<64x128xf32>
    %11 = arith.truncf %10 : vector<64x128xf32> to vector<64x128xbf16>
    %c0_7 = arith.constant 0 : index
    %c0_8 = arith.constant 0 : index
    %12 = vector.load %arg5[%c0_7, %c0_8] : memref<64x128xbf16, #tpu.memory_space<vmem>>, vector<64x128xbf16>
    tpu.vector_store %arg5[%c0_7, %c0_8], %11 {strides = array<i32>} : memref<64x128xbf16, #tpu.memory_space<vmem>>, vector<64x128xbf16>,
    return
  }
  func.func @transform_0(%arg0: i32, %arg1: i32) -> (i32, i32) {
    %c0_i32 = arith.constant 0 : i32
    %c0_i32_0 = arith.constant 0 : i32
    return %arg0, %c0_i32 : i32, i32
  }
  func.func @transform_1(%arg0: i32, %arg1: i32) -> (i32, i32) {
    %c0_i32 = arith.constant 0 : i32
    %c0_i32_0 = arith.constant 0 : i32
    return %c0_i32, %arg1 : i32, i32
  }
  func.func @transform_2(%arg0: i32, %arg1: i32) -> (i32, i32) {
    %c0_i32 = arith.constant 0 : i32
    %c0_i32_0 = arith.constant 0 : i32
    return %c0_i32, %arg1 : i32, i32
  }
  func.func @transform_3(%arg0: i32, %arg1: i32) -> (i32, i32) {
    %c0_i32 = arith.constant 0 : i32
    return %arg0, %arg1 : i32, i32
  }
}

</mosaic_0001>

<bundles_post_ra>
// kernel: tpu_custom_call.1
= control target key start
LH: loop header
LB: loop body
LE: loop exit
PB: predicated region body
PF: predicated region fallthrough
CT: control target
= control target key end

     0   :  { %8 = vsyncpa [#allocation3], 0  ;;  %s793_s0 = inlined_call_operand.vmem [shape: bf16[128,16], index: 0, kind: input, shape index: {}]   ;;  %s794_s1 = inlined_call_operand.vmem [shape: bf16[16,128], index: 1, kind: input, shape index: {}]   ;;  %s795_s2 = inlined_call_operand.vmem [shape: f32[1,128], index: 2, kind: input, shape index: {}]   ;;  %s796_s3 = inlined_call_operand.hbm [shape: bf16[128,128], index: 3, kind: output, shape index: {}]  }
   0x1   :  { %10 = vsyncpa [#allocation3 + $0x1], 0  ;;  %s687_s12 = smov 0   ;;  %s689_s13 = smov 0  }
   0x2   :  { %s691_s14 = smov 0   ;;  %s693_s15 = smov 0  }
   0x3   :  { %s695_s16 = smov 0   ;;  %s697_s17 = smov 0  }
   0x4 LB: > { %s456_s18 = sadd.s32 4294967295, %s663_s17   ;;  %s457_s19 = sadd.s32 4294967294, %s663_s17   ;;  %s663_s17 = sphi %s697_s17, %s16_s17   ;;  %s659_s16 = sphi %s695_s16, %s803_s16   ;;  %s655_s15 = sphi %s693_s15, %s802_s15   ;;  %s651_s14 = sphi %s691_s14, %s801_s14   ;;  %s647_s13 = sphi %s689_s13, %s800_s13   ;;  %s643_s12 = sphi %s687_s12, %s799_s12  }
   0x5   : > { %s28_s20 = sadd.s32 1, %s659_s16  ;;  %s115_s21 = sadd.s32 1, %s651_s14 }
   0x6   : > { %p30_p0 = scmp.ge.s32.totalorder %s28_s20, 2  ;;  %p125_p1 = scmp.ne.s32.totalorder %s651_s14, %s647_s13 }
   0x7   : > { %p126_p2 = scmp.eq.s32.totalorder %s456_s18, 1  ;;  %p131_p3 = scmp.ne.s32.totalorder %s647_s13, %s643_s12 }
   0x8   : > { %s805_s20 = smov (%p30_p0, %s28_s20), 0  ;;  %p132_p5 = scmp.eq.s32.totalorder %s457_s19, 1 }
   0x9   : > { %p727_p4 = por %p126_p2, %p125_p1  ;;  %s110_s23 = ssub.s32 %s659_s16, %s805_s20 }
   0xa   : > { %p462_p6 = scmp.ge.s32.totalorder %s663_s17, 1  ;;  %p113_p7 = scmp.eq.s32.totalorder %s110_s23, 0 }
   0xb   : > { %p734_p8 = por %p132_p5, %p131_p3  ;;  %p172_p9 = scmp.lt.s32.totalorder %s663_s17, 3 }
   0xc   : > { %s740_s25 = scalar_select %p113_p7, %s651_s14, %s115_s21  }
   0xd   : > { %p173_p10 = pnand %p462_p6, %p172_p9 }
   0xe   : > { %s464_s28 = sshll.u32 (!%p173_p10), %s655_s15, 3  ;;  %s200_s8 = sand.u32 (!%p173_p10), 1, %s647_s13  }
   0xf   : > { %176 = sbr.rel (%p173_p10) target bundleno = 177 (0xb1), region = 32  ;;  %p204_p11 = scmp.lt.s32.totalorder (!%p173_p10), %s464_s28, 15 }
  0x10   : > { %s463_s9 = sshll.u32 (!%p173_p10), %s200_s8, 5  ;;  %s500_s10 = sshll.u32 (!%p173_p10), %s655_s15, 5 }
  0x11   : > { %s353_s19 = scalar_lea.hbm (!%p173_p10), %s796_s3, %s500_s10  ;;  %s202_s15 = scalar_lea.vmem (!%p173_p10), [#allocation2], %s463_s9 }
  0x12   : > { %s354_s21 = sshll.u32 (!%p173_p10), %s202_s15, 4  ;;  %s356_s23 = sshll.u32 (!%p173_p10), %s353_s19, 4  ;;  %s355_s21 = int_to_ptr.vmem [resolvable:$true] %s354_s21  ;;  %s357_s23 = int_to_ptr.hbm [resolvable:$true] %s356_s23 }
  0x13   : > { %s341_s26 = scalar_lea.sflag (!%p173_p10), [#allocation3], %s200_s8  ;;  %s599_s27 = sshra.s32 (!%p173_p10), %s357_s23, 4  ;;  %s600_s27 = int_to_ptr.hbm [resolvable:$true] %s599_s27 }
  0x14   : > { %v499_v0 = vld [vmem:[%s794_s1] sm:$0xff]  ;;  %s807_s28 = smov (!%p204_p11, %s464_s28), 15  ;;  %vm258_vm0 = vcmask 130048   ;;  %s605_s4 = scalar_lea.hbm %s796_s3, 64 }
  0x15   : > { %278 = vmatpush.bf16.msra.mxu0 %v499_v0  ;;  %524 = vmatpush.bf16.msra.mxu1 %v499_v0  ;;  %s465_s29 = sshll.u32 %s807_s28, 2  ;;  %v584_v7 = vld [vmem:[%s795_s2] ss:$0 sm:$0xff]  ;;  %s601_s28 = scalar_lea.hbm %s600_s27, 32 }
  0x16   : > { %525 = vmatpush.bf16.msra.mxu2 %v499_v0  ;;  %526 = vmatpush.bf16.msra.mxu3 %v499_v0  ;;  %s207_s5 = scalar_lea.vmem %s793_s0, %s465_s29  ;;  %p602_p12 = scmp.ne.s32.totalorder %s600_s27, %s601_s28 }
  0x17   : > { %v495_v1 = vld [vmem:[%s207_s5] sm:$0xff]  ;;  %v496_v2 = vld [vmem:[%s207_s5 + $0x8] sm:$0xff]  ;;  %v497_v3 = vld [vmem:[%s207_s5 + $0x10] sm:$0xff]  ;;  %p606_p1 = scmp.lt.s32.totalorder %s600_s27, %s796_s3  ;;  %p607_p2 = scmp.lt.s32.totalorder %s605_s4, %s601_s28 }
  0x18   : > { %v498_v4 = vld [vmem:[%s207_s5 + $0x18] sm:$0xff]  ;;  %486 = vmatmul.msk.bf16.vlgmr.msra.gmra.mxu0 %vm258_vm0, %v495_v1  ;;  %487 = vmatmul.msk.bf16.vlgmr.msra.gmra.mxu1 %vm258_vm0, %v496_v2  ;;  %p603_p13 = pnand %p602_p12, %p727_p4 }
  0x19   : > { %488 = vmatmul.msk.bf16.vlgmr.msra.gmra.mxu2 %vm258_vm0, %v497_v3  ;;  %489 = vmatmul.msk.bf16.vlgmr.msra.gmra.mxu3 %vm258_vm0, %v498_v4  ;;  %p608_p3 = por %p607_p2, %p606_p1 }
  0x1a   : > { %p604_p0 = pneg %p603_p13 }
  0x1c   : > { %p609_p5 = pnand %p608_p3, %p604_p0 }
  0x95   : > { %v280_v5 = vpop.f32.mrf.mxu0  ;;  %v285_v6 = vpop.f32.mrf.mxu1 }
  0x96   : > { %v281_v8 = vadd.f32 %v584_v7, %v280_v5  ;;  %v286_v9 = vadd.f32 %v584_v7, %v285_v6 }
  0x98   : > { %v308_v14 = vmul.f32 0.2, %v281_v8  ;;  %v310_v15 = vmul.f32 0.2, %v286_v9  ;;  %vm300_vm1 = vcmp.ge.f32.partialorder %v281_v8, 0.0  ;;  %vm302_vm2 = vcmp.ge.f32.partialorder %v286_v9, 0.0 }
  0x9a   : > { %v316_v22 = vsel %vm300_vm1, %v281_v8, %v308_v14  ;;  %v318_v23 = vsel %vm302_vm2, %v286_v9, %v310_v15 }
  0x9c   : > { %v290_v10 = vpop.f32.mrf.mxu2  ;;  %v295_v11 = vpop.f32.mrf.mxu3 }
  0x9d   : > { %v282_v12 = vpop.f32.mrf.mxu0  ;;  %v287_v13 = vpop.f32.mrf.mxu1  ;;  %v291_v20 = vadd.f32 %v584_v7, %v290_v10  ;;  %v296_v21 = vadd.f32 %v584_v7, %v295_v11 }
  0x9e   : > { %v283_v16 = vadd.f32 %v584_v7, %v282_v12  ;;  %v288_v17 = vadd.f32 %v584_v7, %v287_v13 }
  0x9f   : > { %v312_v30 = vmul.f32 0.2, %v291_v20  ;;  %v314_v31 = vmul.f32 0.2, %v296_v21  ;;  %vm304_vm5 = vcmp.ge.f32.partialorder %v291_v20, 0.0  ;;  %vm306_vm6 = vcmp.ge.f32.partialorder %v296_v21, 0.0 }
  0xa0   : > { %vm301_vm3 = vcmp.ge.f32.partialorder %v283_v16, 0.0  ;;  %v309_v18 = vmul.f32 0.2, %v283_v16  ;;  %vm303_vm4 = vcmp.ge.f32.partialorder %v288_v17, 0.0  ;;  %v311_v19 = vmul.f32 0.2, %v288_v17 }
  0xa1   : > { %v320_v36 = vsel %vm304_vm5, %v291_v20, %v312_v30  ;;  %v322_v37 = vsel %vm306_vm6, %v296_v21, %v314_v31 }
  0xa2   : > { %v317_v24 = vsel %vm301_vm3, %v283_v16, %v309_v18  ;;  %v319_v25 = vsel %vm303_vm4, %v288_v17, %v311_v19 }
  0xa3   : > { %v504_v26 = vpack.c.bf16 %v317_v24, %v316_v22  ;;  %v509_v27 = vpack.c.bf16 %v319_v25, %v318_v23 }
  0xa4   : > { %v292_v28 = vpop.f32.mrf.mxu2  ;;  %v297_v29 = vpop.f32.mrf.mxu3 }
  0xa5   : > { %505 = vst [vmem:[%s202_s15] sm:$0xff] %v504_v26   ;;  %v293_v32 = vadd.f32 %v584_v7, %v292_v28  ;;  %v298_v33 = vadd.f32 %v584_v7, %v297_v29 }
  0xa6   : > { %521 = vst [vmem:[%s202_s15 + $0x8] sm:$0xff] %v509_v27  }
  0xa7   : > { %vm305_vm7 = vcmp.ge.f32.partialorder %v293_v32, 0.0  ;;  %v313_v34 = vmul.f32 0.2, %v293_v32  ;;  %vm307_vm8 = vcmp.ge.f32.partialorder %v298_v33, 0.0  ;;  %v315_v35 = vmul.f32 0.2, %v298_v33 }
  0xa9   : > { %v321_v38 = vsel %vm305_vm7, %v293_v32, %v313_v34  ;;  %v323_v39 = vsel %vm307_vm8, %v298_v33, %v315_v35 }
  0xaa   : > { %v514_v40 = vpack.c.bf16 %v321_v38, %v320_v36  ;;  %v519_v41 = vpack.c.bf16 %v323_v39, %v322_v37 }
  0xac   : > { %522 = vst [vmem:[%s202_s15 + $0x10] sm:$0xff] %v514_v40  }
  0xad   : > { %523 = vst [vmem:[%s202_s15 + $0x18] sm:$0xff] %v519_v41  }
  0xae   : > { %612 = shalt.err (!%p609_p5)
}
  0xaf   : > { %s665_s7 = smov 64   ;;  %s666_s8 = smov 4  }
  0xb0   : > { %527 = dma.vmem_to_hbm [thread:$0]  (%p727_p4), %s355_s21, 512, %s357_s23, %s341_s26, %s665_s7, %s665_s7, %s666_s8  }
  0xb1 PF: > { %p533_p6 = scmp.ge.s32.totalorder %s663_s17, 2  ;;  %s371_s9 = sand.u32 1, %s643_s12  }
  0xb2   : > { %s372_s10 = scalar_lea.sflag [#allocation3], %s371_s9 }
  0xb3   : > { %p530_p7 = pnand %p533_p6, %p734_p8 }
  0xb5   : > { %p531_p9 = pneg %p530_p7 }
  0xb7   : > { %638 = dma.done.wait (%p531_p9), %s372_s10, 512  }
  0xb8   : > { %640 = vsyncadd (%p531_p9), %s372_s10, 4294966784  ;;  %s16_s17 = sadd.s32 1, %s663_s17   ;;  %s799_s12 = smov %s647_s13 }
  0xb9   : > { %p13_p10 = scmp.ge.s32.totalorder %s16_s17, 4   ;;  %s800_s13 = smov %s651_s14 }
  0xba   : > { %s801_s14 = smov %s740_s25  ;;  %s802_s15 = smov %s659_s16 }
  0xbb   : > { %s803_s16 = smov %s805_s20  ;;  %15 = sbr.rel (!%p13_p10) target bundleno = 4 (0x4), region = 73 }
  0xc0   :  { %378 = vsyncpa [#allocation3], 1 }
  0xc1   :  { %380 = vsyncpa [#allocation3 + $0x1], 1 }

</bundles_post_ra>
